<compile_context>
chip_gen: v5e
topology: v5e:2x2
jax: 0.10.0
libtpu: 0.0.40
codegen_flags: <defaults>
</compile_context>

<pallas_src>
import functools

import jax
import jax.numpy as jnp
from jax import lax
from jax.experimental import pallas as pl
from jax.experimental.pallas import tpu as pltpu

_MiB = 1024 * 1024


def _add_norm_kernel(x_ref, y_ref, g_ref, b_ref, o_ref, *, eps: float, hidden: int):
    x = x_ref[...].astype(jnp.float32)
    y = y_ref[...].astype(jnp.float32)
    z = x + y

    inv_h = jnp.float32(1.0 / hidden)
    mean = jnp.sum(z, axis=-1, keepdims=True) * inv_h
    zc = z - mean
    # Centered two-pass variance: avoids E[z^2]-E[z]^2 cancellation.
    var = jnp.sum(zc * zc, axis=-1, keepdims=True) * inv_h
    z_hat = zc * lax.rsqrt(var + jnp.float32(eps))   # rsqrt -> EUP slot (free)

    g = g_ref[...].astype(jnp.float32)
    b = b_ref[...].astype(jnp.float32)
    o_ref[...] = (z_hat * g + b).astype(o_ref.dtype)


def _round_up(n, m):
    return ((n + m - 1) // m) * m


def _vmem_capacity_bytes():
    """Physical per-core VMEM; conservative 64 MiB (v7x-sized) if unknown."""
    try:
        if jax.devices()[0].platform == "tpu":
            return int(pltpu.get_tpu_info().vmem_capacity_bytes)
    except Exception:
        pass
    return 64 * _MiB


def add_norm(x, y, gamma, beta, *, dropout_p=0.1, training=False, eps=1e-5,
             seed=0, row_tile=None):
    """AddNorm forward: LayerNorm(dropout(y) + x) over the last axis."""
    assert x.shape == y.shape
    hidden = x.shape[-1]
    assert gamma.shape == (hidden,) and beta.shape == (hidden,)

    # Inverted dropout (like nn.Dropout).  Mask is drawn host-side with
    # jax.random so the kernel lowers on every backend; eval mode skips this
    # entirely and the kernel streams exactly 3 arrays (X, Y, out).
    if training and dropout_p > 0.0:
        if dropout_p >= 1.0:
            y = jnp.zeros_like(y)
        else:
            keep = jax.random.bernoulli(jax.random.PRNGKey(seed),
                                        1.0 - dropout_p, y.shape)
            y = (jnp.where(keep, y, jnp.zeros_like(y))
                 * (1.0 / (1.0 - dropout_p))).astype(y.dtype)

    rows = 1
    for d in x.shape[:-1]:
        rows *= d

    itemsize = jnp.dtype(x.dtype).itemsize
    # Minimum sublane multiple per packed dtype: f32 -> 8, bf16 -> 16, int8 -> 32.
    sublane = {4: 8, 2: 16, 1: 32}.get(itemsize, 8)

    # Per-generation VMEM budgets (v5e/v6e: 128 MiB physical, v7x: 64 MiB).
    vmem_cap = _vmem_capacity_bytes()
    if vmem_cap >= 128 * _MiB:
        stream_budget, hard_cap = 88 * _MiB, 112 * _MiB
    else:
        stream_budget, hard_cap = 36 * _MiB, 56 * _MiB

    # Bytes per streamed row: X/Y/out double-buffered plus ~4 f32 temporaries
    # (the kernel upcasts to f32 and materializes z / zc / zc^2 / z_hat).
    per_row_bytes = 3 * 2 * hidden * itemsize + 4 * hidden * 4

    if row_tile is None:
        row_tile = stream_budget // max(per_row_bytes, 1)
    row_tile = int(row_tile)

    if rows <= sublane:
        # Tiny problem: a single block exactly covering the valid rows.
        row_tile = rows
    else:
        row_tile = max(sublane, min(row_tile, 8192))
        row_tile = min(row_tile, _round_up(rows, sublane))
        # Keep >= 2 grid steps so v7x's two TensorCores both get work.
        row_tile = min(row_tile, _round_up(pl.cdiv(rows, 2), sublane))
        row_tile = max(sublane, (row_tile // sublane) * sublane)

    x2 = x.reshape(rows, hidden)
    y2 = y.reshape(rows, hidden)
    g2 = gamma.reshape(1, hidden)
    b2 = beta.reshape(1, hidden)

    # No host-side padding: the ragged last block is handled by Pallas (masked
    # output writes); per-row statistics keep any garbage tail rows harmless.
    grid = (pl.cdiv(rows, row_tile),)

    kernel = functools.partial(_add_norm_kernel, eps=float(eps), hidden=int(hidden))

    param_itemsize = jnp.dtype(gamma.dtype).itemsize
    step_bytes = row_tile * per_row_bytes + 2 * 2 * hidden * param_itemsize
    vmem_limit = int(min(hard_cap,
                         max(32 * _MiB, int(1.15 * step_bytes) + 2 * _MiB)))

    cost = pl.CostEstimate(
        flops=8 * rows * hidden,
        transcendentals=rows,
        bytes_accessed=3 * rows * hidden * itemsize + 2 * hidden * param_itemsize,
    )

    out2 = pl.pallas_call(
        kernel,
        out_shape=jax.ShapeDtypeStruct((rows, hidden), x.dtype),
        grid_spec=pltpu.PrefetchScalarGridSpec(
            num_scalar_prefetch=0,
            grid=grid,
            in_specs=[
                pl.BlockSpec((row_tile, hidden), lambda i: (i, 0)),  # X
                pl.BlockSpec((row_tile, hidden), lambda i: (i, 0)),  # Y (post-dropout)
                pl.BlockSpec((1, hidden), lambda i: (0, 0)),         # gamma (revisited)
                pl.BlockSpec((1, hidden), lambda i: (0, 0)),         # beta  (revisited)
            ],
            out_specs=pl.BlockSpec((row_tile, hidden), lambda i: (i, 0)),
        ),
        compiler_params=pltpu.CompilerParams(
            dimension_semantics=("parallel",),
            vmem_limit_bytes=vmem_limit,
        ),
        cost_estimate=cost,
    )(x2, y2, g2, b2)

    return out2.reshape(x.shape)


def add_norm_ref(x, y, gamma, beta, eps=1e-5):
    # Pure-JAX reference (dropout in eval mode == identity).
    z = y + x
    mean = jnp.mean(z, axis=-1, keepdims=True)
    var = jnp.mean((z - mean) ** 2, axis=-1, keepdims=True)
    return (z - mean) / jnp.sqrt(var + eps) * gamma + beta


if __name__ == "__main__":
    key = jax.random.PRNGKey(0)
    kx, ky = jax.random.split(key)

    batch, seq, hidden = 2, 8, 32
    x = jax.random.normal(kx, (batch, seq, hidden), dtype=jnp.float32)
    y = jax.random.normal(ky, (batch, seq, hidden), dtype=jnp.float32)

    # nn.LayerNorm init: weight = ones, bias = zeros (deterministic).
    gamma = jnp.ones((hidden,), dtype=jnp.float32)
    beta = jnp.zeros((hidden,), dtype=jnp.float32)

    # Forward in eval mode (dropout is identity), matching AddNorm.eval().
    out = add_norm(x, y, gamma, beta, dropout_p=0.1, training=False)
    out = jax.block_until_ready(out)

    ref = add_norm_ref(x, y, gamma, beta)
    assert out.shape == (batch, seq, hidden)
    assert jnp.allclose(out, ref, atol=1e-5, rtol=1e-5), "mismatch vs reference"

    # Also exercise the training (dropout-active) path once for coverage.
    out_tr = add_norm(x, y, gamma, beta, dropout_p=0.1, training=True, seed=123)
    out_tr = jax.block_until_ready(out_tr)
    assert out_tr.shape == (batch, seq, hidden)
    assert bool(jnp.all(jnp.isfinite(out_tr)))

    print("KERNEL_OK")
</pallas_src>

<mosaic_0001>
module attributes {stable_mosaic.version = 11 : i64} {
  func.func @_add_norm_kernel(%arg0: i32, %arg1: memref<8x32xf32, #tpu.memory_space<vmem>>, %arg2: memref<8x32xf32, #tpu.memory_space<vmem>>, %arg3: memref<1x32xf32, #tpu.memory_space<vmem>>, %arg4: memref<1x32xf32, #tpu.memory_space<vmem>>, %arg5: memref<8x32xf32, #tpu.memory_space<vmem>>) attributes {dimension_semantics = [#tpu.dimension_semantics<parallel>], iteration_bounds = array<i64: 2>, scalar_prefetch = 0 : i64, scratch_operands = 0 : i64, tpu.core_type = #tpu.core_type<tc>, window_params = [{transform_indices = @transform_0, window_bounds = array<i64: 8, 32>}, {transform_indices = @transform_1, window_bounds = array<i64: 8, 32>}, {pipeline_mode = #tpu.pipeline_mode<synchronous>, transform_indices = @transform_2, window_bounds = array<i64: 1, 32>}, {pipeline_mode = #tpu.pipeline_mode<synchronous>, transform_indices = @transform_3, window_bounds = array<i64: 1, 32>}, {transform_indices = @transform_4, window_bounds = array<i64: 8, 32>}]} {
    %c0 = arith.constant 0 : index
    %c0_0 = arith.constant 0 : index
    %0 = vector.load %arg1[%c0, %c0_0] : memref<8x32xf32, #tpu.memory_space<vmem>>, vector<8x32xf32>
    %c0_1 = arith.constant 0 : index
    %c0_2 = arith.constant 0 : index
    %1 = vector.load %arg2[%c0_1, %c0_2] : memref<8x32xf32, #tpu.memory_space<vmem>>, vector<8x32xf32>
    %2 = arith.addf %0, %1 : vector<8x32xf32>
    %cst = arith.constant dense<0.000000e+00> : vector<8xf32>
    %3 = vector.multi_reduction <add>, %2, %cst [1] : vector<8x32xf32> to vector<8xf32>
    %4 = vector.shape_cast %3 : vector<8xf32> to vector<8x1xf32>
    %cst_3 = arith.constant 3.125000e-02 : f32
    %5 = vector.broadcast %cst_3 : f32 to vector<8x1xf32>
    %6 = arith.mulf %4, %5 : vector<8x1xf32>
    %7 = vector.broadcast %6 : vector<8x1xf32> to vector<8x32xf32>
    %8 = arith.subf %2, %7 : vector<8x32xf32>
    %9 = arith.mulf %8, %8 : vector<8x32xf32>
    %cst_4 = arith.constant dense<0.000000e+00> : vector<8xf32>
    %10 = vector.multi_reduction <add>, %9, %cst_4 [1] : vector<8x32xf32> to vector<8xf32>
    %11 = vector.shape_cast %10 : vector<8xf32> to vector<8x1xf32>
    %cst_5 = arith.constant 3.125000e-02 : f32
    %12 = vector.broadcast %cst_5 : f32 to vector<8x1xf32>
    %13 = arith.mulf %11, %12 : vector<8x1xf32>
    %cst_6 = arith.constant 9.99999974E-6 : f32
    %14 = vector.broadcast %cst_6 : f32 to vector<8x1xf32>
    %15 = arith.addf %13, %14 : vector<8x1xf32>
    %16 = math.rsqrt %15 : vector<8x1xf32>
    %17 = vector.broadcast %16 : vector<8x1xf32> to vector<8x32xf32>
    %18 = arith.mulf %8, %17 : vector<8x32xf32>
    %c0_7 = arith.constant 0 : index
    %c0_8 = arith.constant 0 : index
    %19 = vector.load %arg3[%c0_7, %c0_8] : memref<1x32xf32, #tpu.memory_space<vmem>>, vector<1x32xf32>
    %c0_9 = arith.constant 0 : index
    %c0_10 = arith.constant 0 : index
    %20 = vector.load %arg4[%c0_9, %c0_10] : memref<1x32xf32, #tpu.memory_space<vmem>>, vector<1x32xf32>
    %21 = vector.broadcast %19 : vector<1x32xf32> to vector<8x32xf32>
    %22 = arith.mulf %18, %21 : vector<8x32xf32>
    %23 = vector.broadcast %20 : vector<1x32xf32> to vector<8x32xf32>
    %24 = arith.addf %22, %23 : vector<8x32xf32>
    %c0_11 = arith.constant 0 : index
    %c0_12 = arith.constant 0 : index
    %25 = vector.load %arg5[%c0_11, %c0_12] : memref<8x32xf32, #tpu.memory_space<vmem>>, vector<8x32xf32>
    tpu.vector_store %arg5[%c0_11, %c0_12], %24 {strides = array<i32>} : memref<8x32xf32, #tpu.memory_space<vmem>>, vector<8x32xf32>,
    return
  }
  func.func @transform_0(%arg0: i32) -> (i32, i32) {
    %c0_i32 = arith.constant 0 : i32
    %c0_i32_0 = arith.constant 0 : i32
    return %arg0, %c0_i32 : i32, i32
  }
  func.func @transform_1(%arg0: i32) -> (i32, i32) {
    %c0_i32 = arith.constant 0 : i32
    %c0_i32_0 = arith.constant 0 : i32
    return %arg0, %c0_i32 : i32, i32
  }
  func.func @transform_2(%arg0: i32) -> (i32, i32) {
    %c0_i32 = arith.constant 0 : i32
    %c0_i32_0 = arith.constant 0 : i32
    %c0_i32_1 = arith.constant 0 : i32
    return %c0_i32, %c0_i32_0 : i32, i32
  }
  func.func @transform_3(%arg0: i32) -> (i32, i32) {
    %c0_i32 = arith.constant 0 : i32
    %c0_i32_0 = arith.constant 0 : i32
    %c0_i32_1 = arith.constant 0 : i32
    return %c0_i32, %c0_i32_0 : i32, i32
  }
  func.func @transform_4(%arg0: i32) -> (i32, i32) {
    %c0_i32 = arith.constant 0 : i32
    %c0_i32_0 = arith.constant 0 : i32
    return %arg0, %c0_i32 : i32, i32
  }
}

</mosaic_0001>

<bundles_post_ra>
// kernel: tpu_custom_call.1
= control target key start
LH: loop header
LB: loop body
LE: loop exit
PB: predicated region body
PF: predicated region fallthrough
CT: control target
= control target key end

     0   :  { %s801_s0 = inlined_call_operand.hbm [shape: f32[16,32], index: 0, kind: input, shape index: {}]   ;;  %s802_s1 = inlined_call_operand.hbm [shape: f32[16,32], index: 1, kind: input, shape index: {}]   ;;  %s803_s2 = inlined_call_operand.vmem [shape: f32[1,32], index: 2, kind: input, shape index: {}]   ;;  %s804_s3 = inlined_call_operand.vmem [shape: f32[1,32], index: 3, kind: input, shape index: {}]   ;;  %s805_s4 = inlined_call_operand.hbm [shape: f32[16,32], index: 4, kind: output, shape index: {}]  }
   0x1   :  { %806 = sst [smem:[#allocation11_spill]] %s801_s0 }
   0x2   :  { %9 = vsyncpa [#allocation3], 0 }
   0x3   :  { %11 = vsyncpa [#allocation3 + $0x1], 0 }
   0x4   :  { %12 = vsyncpa [#allocation6], 0 }
   0x5   :  { %14 = vsyncpa [#allocation6 + $0x1], 0 }
   0x6   :  { %15 = vsyncpa [#allocation4], 0 }
   0x7   :  { %17 = vsyncpa [#allocation4 + $0x1], 0  ;;  %s627_s15 = smov 0   ;;  %s629_s16 = smov 0  }
   0x8   :  { %s631_s17 = smov 0   ;;  %s633_s18 = smov 0  }
   0x9 LB: > { %s648_s19 = sadd.s32 4294967295, %s600_s18   ;;  %s400_s20 = sadd.s32 4294967294, %s600_s18   ;;  %s600_s18 = sphi %s633_s18, %s818_s18   ;;  %s596_s17 = sphi %s631_s17, %s817_s17   ;;  %s592_s16 = sphi %s629_s16, %s816_s16   ;;  %s588_s15 = sphi %s627_s15, %s815_s15  }
   0xa   : > { %s652_s21 = sadd.s32 1, %s600_s18   ;;  %s30_s22 = sadd.s32 1, %s596_s17 }
   0xb   : > { %s27_s23 = ssub.s32 %s600_s18, %s652_s21  ;;  %p37_p0 = scmp.ne.s32.totalorder %s596_s17, %s592_s16 }
   0xc   : > { %p28_p1 = scmp.eq.s32.totalorder %s27_s23, 0  ;;  %p38_p2 = scmp.eq.s32.totalorder %s600_s18, 0 }
   0xd   : > { %p43_p3 = scmp.ne.s32.totalorder %s592_s16, %s588_s15  ;;  %p44_p4 = scmp.eq.s32.totalorder %s648_s19, 0 }
   0xe   : > { %s664_s24 = scalar_select %p28_p1, %s596_s17, %s30_s22  }
   0xf   : > { %p666_p5 = por %p38_p2, %p37_p0  ;;  %p670_p6 = por %p44_p4, %p43_p3 }
  0x10   : > { %p135_p7 = scmp.eq.s32.totalorder %s648_s19, 1  ;;  %p141_p8 = scmp.eq.s32.totalorder %s400_s20, 1 }
  0x11   : > { %p432_p10 = scmp.lt.s32.totalorder %s600_s18, 2  ;;  %s686_s29 = sand.u32 1, %s596_s17  }
  0x12   : > { %p677_p11 = por %p135_p7, %p37_p0  ;;  %p681_p12 = por %p141_p8, %p43_p3 }
  0x13   : > { %s404_s30 = sshll.u32 %s600_s18, 3  ;;  %s403_s5 = sshll.u32 %s686_s29, 3 }
  0x14   : > { %s811_s0 = sld [smem:[#allocation11_spill]]  ;;  %s171_s10 = scalar_lea.vmem [#allocation2], %s403_s5 }
  0x15   : > { %s179_s11 = sshll.u32 %s171_s10, 4  ;;  %p695_p13 = pnand %p432_p10, %p666_p5  ;;  %s180_s11 = int_to_ptr.vmem [resolvable:$true] %s179_s11 }
  0x16   : > { %p407_p0 = scmp.ge.s32.totalorder %s600_s18, 1  ;;  %p203_p1 = scmp.lt.s32.totalorder %s600_s18, 3 }
  0x17   : > { %s168_s13 = scalar_lea.sflag [#allocation3], %s686_s29  ;;  %p474_p3 = pneg %p695_p13 }
  0x1a   : > { %s175_s8 = scalar_lea.hbm %s811_s0, %s404_s30  ;;  %s477_s25 = scalar_lea.hbm %s811_s0, 16 }
  0x1b   : > { %s177_s9 = sshll.u32 %s175_s8, 4  ;;  %s178_s9 = int_to_ptr.hbm [resolvable:$true] %s177_s9 }
  0x1c   : > { %s470_s14 = sshra.s32 %s178_s9, 4  ;;  %s471_s14 = int_to_ptr.hbm [resolvable:$true] %s470_s14 }
  0x1d   : > { %s472_s20 = scalar_lea.hbm %s471_s14, 8  ;;  %p478_p5 = scmp.lt.s32.totalorder %s471_s14, %s811_s0 }
  0x1e   : > { %p473_p2 = scmp.ne.s32.totalorder %s471_s14, %s472_s20  ;;  %p479_p8 = scmp.lt.s32.totalorder %s477_s25, %s472_s20 }
  0x20   : > { %p475_p4 = pnand %p474_p3, %p473_p2  ;;  %p480_p10 = por %p479_p8, %p478_p5 }
  0x22   : > { %p476_p7 = pneg %p475_p4 }
  0x24   : > { %p481_p9 = pnand %p480_p10, %p476_p7 }
  0x26   : > { %484 = shalt.err (!%p481_p9)
}
  0x27   : > { %424 = dma.hbm_to_vmem [thread:$0]  (!%p695_p13), %s178_s9, 128, %s180_s11, %s168_s13  }
  0x28   : > { %p719_p2 = pnand %p407_p0, %p203_p1  ;;  %s194_s14 = scalar_lea.hbm %s802_s1, %s404_s30 }
  0x29   : > { %s196_s20 = sshll.u32 %s194_s14, 4  ;;  %s190_s23 = scalar_lea.vmem [#allocation5], %s403_s5  ;;  %s197_s20 = int_to_ptr.hbm [resolvable:$true] %s196_s20 }
  0x2a   : > { %s198_s25 = sshll.u32 %s190_s23, 4  ;;  %s187_s6 = scalar_lea.sflag [#allocation6], %s686_s29  ;;  %s199_s25 = int_to_ptr.vmem [resolvable:$true] %s198_s25 }
  0x2b   : > { %s500_s7 = sshra.s32 %s197_s20, 4  ;;  %s507_s13 = scalar_lea.hbm %s802_s1, 16  ;;  %s501_s7 = int_to_ptr.hbm [resolvable:$true] %s500_s7 }
  0x2c   : > { %s502_s0 = scalar_lea.hbm %s501_s7, 8  ;;  %p508_p4 = scmp.lt.s32.totalorder %s501_s7, %s802_s1 }
  0x2d   : > { %p503_p9 = scmp.ne.s32.totalorder %s501_s7, %s502_s0  ;;  %p509_p7 = scmp.lt.s32.totalorder %s507_s13, %s502_s0 }
  0x2f   : > { %p505_p0 = pnand %p503_p9, %p474_p3  ;;  %p510_p5 = por %p509_p7, %p508_p4 }
  0x31   : > { %p506_p1 = pneg %p505_p0 }
  0x33   : > { %p511_p8 = pnand %p510_p5, %p506_p1 }
  0x35   : > { %514 = shalt.err (!%p511_p8)
}
  0x36   : > { %427 = dma.hbm_to_vmem [thread:$0]  (!%p695_p13), %s197_s20, 128, %s199_s25, %s187_s6  }
  0x37   : > { %207 = sbr.rel (%p719_p2) target bundleno = 337 (0x151), region = 36  ;;  %s741_s29 = sand.u32 (!%p719_p2), 1, %s592_s16  }
  0x38   : > { %s744_s5 = sshll.u32 (!%p719_p2), %s741_s29, 3  ;;  %s210_s22 = scalar_lea.sflag (!%p719_p2), [#allocation3], %s741_s29 }
  0x39   : > { %s213_s0 = scalar_lea.vmem (!%p719_p2), [#allocation2], %s744_s5 }
  0x3c   : > { %575 = dma.done.wait (%p670_p6), %s210_s22, 128  }
  0x3d   : > { %577 = vsyncadd (%p670_p6), %s210_s22, 4294967168  ;;  %s220_s12 = scalar_lea.sflag [#allocation6], %s741_s29  ;;  %s223_s8 = scalar_lea.vmem [#allocation5], %s744_s5 }
  0x3e   : > { %579 = dma.done.wait (%p670_p6), %s220_s12, 128  }
  0x3f   : > { %581 = vsyncadd (%p670_p6), %s220_s12, 4294967168  ;;  %v254_v0 = vld [vmem:[%s213_s0] sm:$0xff]  ;;  %v255_v1 = vld [vmem:[%s223_s8] sm:$0xff]  ;;  %vm257_vm0 = vcmask 261120   ;;  %s412_s26 = sshll.u32 %s648_s19, 3  ;;  %s253_s19 = scalar_lea.vmem [#allocation7], %s744_s5 }
  0x40   : > { %v256_v2 = vadd.f32 %v255_v1, %v254_v0  ;;  %v466_v18 = vld [vmem:[%s803_s2] ss:$0 sm:$0xff]  ;;  %s302_s6 = scalar_lea.hbm %s805_s4, %s412_s26  ;;  %s304_s11 = sshll.u32 %s253_s19, 4  ;;  %s305_s11 = int_to_ptr.vmem [resolvable:$true] %s304_s11 }
  0x41   : > { %v467_v20 = vld [vmem:[%s804_s3] ss:$0 sm:$0xff]  ;;  %s306_s13 = sshll.u32 %s302_s6, 4  ;;  %s292_s10 = scalar_lea.sflag [#allocation4], %s741_s29  ;;  %s307_s13 = int_to_ptr.hbm [resolvable:$true] %s306_s13 }
  0x42   : > { %v258_v3 = vsel %vm257_vm0, %v256_v2, 0.0  ;;  %s544_s30 = sshra.s32 %s307_s13, 4  ;;  %s550_s5 = scalar_lea.hbm %s805_s4, 16  ;;  %s545_s30 = int_to_ptr.hbm [resolvable:$true] %s544_s30 }
  0x43   : > { %259 = vadd.xlane.f32.xlu0 %v258_v3  ;;  %s546_s22 = scalar_lea.hbm %s545_s30, 8  ;;  %p551_p10 = scmp.lt.s32.totalorder %s545_s30, %s805_s4 }
  0x44   : > { %p547_p6 = scmp.ne.s32.totalorder %s545_s30, %s546_s22  ;;  %p552_p2 = scmp.lt.s32.totalorder %s550_s5, %s546_s22 }
  0x46   : > { %p548_p13 = pnand %p547_p6, %p677_p11  ;;  %p553_p9 = por %p552_p2, %p551_p10 }
  0x48   : > { %p549_p3 = pneg %p548_p13 }
  0x4a   : > { %p554_p0 = pnand %p553_p9, %p549_p3 }
  0xb6   : > { %v260_v4 = vpop.xlane.xlu0 %259 }
  0xb7   : > { %v261_v5 = vmul.f32 0.03125, %v260_v4 }
  0xb9   : > { %v262_v6 = vsub.f32 %v256_v2, %v261_v5 }
  0xbb   : > { %v263_v7 = vmul.f32 %v262_v6, %v262_v6 }
  0xbd   : > { %v264_v8 = vsel %vm257_vm0, %v263_v7, 0.0 }
  0xbe   : > { %265 = vadd.xlane.f32.xlu0 %v264_v8 }
 0x131   : > { %v266_v9 = vpop.xlane.xlu0 %265 }
 0x132   : > { %v267_v10 = vmul.f32 0.03125, %v266_v9 }
 0x134   : > { %v268_v11 = vadd.f32 1e-05, %v267_v10 }
 0x136   : > { %468 = vrsqrt.f32 %v268_v11  ;;  %vm275_vm2 = vweird.f32 %v268_v11 }
 0x13c   : > { %v469_v12 = vpop.eup %468 }
 0x13d   : > { %v270_v13 = vmul.f32 %v469_v12, %v268_v11  ;;  %vm276_vm1 = vweird.f32 %v469_v12 }
 0x13e   : > { %vm277_vm3 = vmor %vm275_vm2, %vm276_vm1 }
 0x13f   : > { %v271_v14 = vmul.f32 %v469_v12, %v270_v13 }
 0x141   : > { %v272_v15 = vmul.f32 0.5, %v271_v14 }
 0x143   : > { %v273_v16 = vsub.f32 1.5, %v272_v15 }
 0x145   : > { %v274_v17 = vmul.f32 %v469_v12, %v273_v16 }
 0x147   : > { %v278_v19 = vsel %vm277_vm3, %v469_v12, %v274_v17 }
 0x148   : > { %v279_v21 = vmul.f32 %v278_v19, %v262_v6 }
 0x14a   : > { %v285_v22 = vmul.f32 %v466_v18, %v279_v21 }
 0x14c   : > { %v289_v23 = vadd.f32 %v467_v20, %v285_v22 }
 0x14e   : > { %290 = vst.msk [vmem:[%s253_s19] sm:$0xff] %vm257_vm0, %v289_v23 }
 0x14f   : > { %557 = shalt.err (!%p554_p0)
}
 0x150   : > { %419 = dma.vmem_to_hbm [thread:$0]  (%p677_p11), %s305_s11, 128, %s307_s13, %s292_s10  }
 0x151 PF: > { %s318_s29 = sand.u32 1, %s588_s15   ;;  %p814_p1 = scmp.ge.s32.totalorder %s600_s18, 2 }
 0x152   : > { %s319_s14 = scalar_lea.sflag [#allocation4], %s318_s29 }
 0x153   : > { %p429_p4 = pnand %p814_p1, %p681_p12 }
 0x155   : > { %p430_p7 = pneg %p429_p4 }
 0x157   : > { %583 = dma.done.wait (%p430_p7), %s319_s14, 128  }
 0x158   : > { %585 = vsyncadd (%p430_p7), %s319_s14, 4294967168  ;;  %p20_p5 = scmp.ge.s32.totalorder %s652_s21, 4   ;;  %s815_s15 = smov %s592_s16 }
 0x159   : > { %s816_s16 = smov %s596_s17  ;;  %s817_s17 = smov %s664_s24 }
 0x15a   : > { %s818_s18 = smov %s652_s21  ;;  %22 = sbr.rel (!%p20_p5) target bundleno = 9 (0x9), region = 94 }
 0x15f   :  { %325 = vsyncpa [#allocation3], 1 }
 0x160   :  { %327 = vsyncpa [#allocation3 + $0x1], 1 }
 0x161   :  { %328 = vsyncpa [#allocation6], 1 }
 0x162   :  { %330 = vsyncpa [#allocation6 + $0x1], 1 }
 0x163   :  { %331 = vsyncpa [#allocation4], 1 }
 0x164   :  { %333 = vsyncpa [#allocation4 + $0x1], 1 }

</bundles_post_ra>
